<compile_context>
chip_gen: v5e
topology: v5e:2x2
jax: 0.10.0
libtpu: 0.0.40
codegen_flags: <defaults>
</compile_context>

<pallas_src>
import functools
import math

import jax
import jax.numpy as jnp
from jax import lax
from jax.experimental import pallas as pl
from jax.experimental.pallas import tpu as pltpu

_TARGET_TILE_ELEMS = 256 * 1024  # ~1 MiB per f32 block; (in+out) x 2 bufs ~= 4 MiB


def _apply_noise(x_ref, o_ref, noise_f32, sigma, use_relative):
    x = x_ref[...].astype(jnp.float32)
    if use_relative:
        y = x + noise_f32 * (sigma * x)
    else:
        y = x + noise_f32 * sigma
    o_ref[...] = y.astype(o_ref.dtype)


def _gaussian_noise_kernel_tpu(seed_ref, x_ref, o_ref, *, sigma, use_relative):
    # Per-tile seeding: mix program_id so every grid tile draws independent noise.
    pltpu.prng_seed(seed_ref[0], pl.program_id(0))
    noise = pltpu.stateful_normal(x_ref.shape, jnp.float32)
    _apply_noise(x_ref, o_ref, noise, sigma, use_relative)


def _hash_u32(v):
    # lowbias32 integer finalizer (good avalanche, integer VPU ops only).
    v = v ^ (v >> 16)
    v = v * jnp.uint32(0x7FEB352D)
    v = v ^ (v >> 15)
    v = v * jnp.uint32(0x846CA68B)
    v = v ^ (v >> 16)
    return v


def _gaussian_noise_kernel_portable(seed_ref, x_ref, o_ref, *, sigma, use_relative):
    # Fallback for non-TPU / interpret execution: counter hash -> uniforms -> Box-Muller.
    tile_r, lane = x_ref.shape
    row = lax.broadcasted_iota(jnp.uint32, (tile_r, lane), 0)
    col = lax.broadcasted_iota(jnp.uint32, (tile_r, lane), 1)
    pid = pl.program_id(0).astype(jnp.uint32)
    idx = (pid * jnp.uint32(tile_r) + row) * jnp.uint32(lane) + col
    key = _hash_u32(seed_ref[0].astype(jnp.uint32) ^ jnp.uint32(0x9E3779B9))
    b1 = _hash_u32((idx * jnp.uint32(2)) ^ key)
    b2 = _hash_u32((idx * jnp.uint32(2) + jnp.uint32(1)) ^ key)
    inv24 = jnp.float32(1.0 / 16777216.0)
    u1 = ((b1 >> 8).astype(jnp.float32) + 1.0) * inv24   # (0, 1]
    u2 = (b2 >> 8).astype(jnp.float32) * inv24            # [0, 1)
    r = jnp.sqrt(-2.0 * jnp.log(u1))
    noise = r * jnp.cos(jnp.float32(2.0 * math.pi) * u2)
    _apply_noise(x_ref, o_ref, noise, sigma, use_relative)


def _choose_lane(total):
    # Widest lane-dense last dim (multiple of 128) with <= ~12.5% padding overhead.
    for lane in (1024, 512, 256):
        pad = (-total) % (8 * lane)
        if pad == 0 or pad * 8 <= total:
            return lane
    return 128


def gaussian_noise(x, seed, *, sigma=0.1, use_relative=False,
                   is_relative_detach=True, training=True):
    """Pallas implementation of GaussianNoise.forward."""
    del is_relative_detach  # forward value is identical; only gradients differ.
    if (not training) or sigma == 0:
        return x

    orig_shape = x.shape
    total = math.prod(orig_shape) if orig_shape else 1

    lane = _choose_lane(total)
    chunk = 8 * lane
    padded = ((total + chunk - 1) // chunk) * chunk
    x_flat = jnp.reshape(x, (total,))
    if padded != total:
        x_flat = jnp.pad(x_flat, (0, padded - total))
    rows = padded // lane
    x2d = jnp.reshape(x_flat, (rows, lane))  # native dtype; no f32 round-trip

    # ~1 MiB (f32) blocks, multiple of 8 sublanes; cdiv grid handles ragged edge.
    tile_r = max(8, min(rows, (_TARGET_TILE_ELEMS // lane) // 8 * 8))
    grid = (pl.cdiv(rows, tile_r),)

    on_tpu = jax.default_backend() == "tpu"
    body = _gaussian_noise_kernel_tpu if on_tpu else _gaussian_noise_kernel_portable
    kernel = functools.partial(body, sigma=float(sigma),
                               use_relative=bool(use_relative))

    seed_arr = jnp.asarray([seed], dtype=jnp.int32)

    out2d = pl.pallas_call(
        kernel,
        out_shape=jax.ShapeDtypeStruct((rows, lane), x2d.dtype),
        grid=grid,
        in_specs=[
            pl.BlockSpec(memory_space=pltpu.MemorySpace.SMEM),   # seed scalar
            pl.BlockSpec((tile_r, lane), lambda i: (i, 0)),       # x row tile
        ],
        out_specs=pl.BlockSpec((tile_r, lane), lambda i: (i, 0)),
        input_output_aliases={1: 0},  # x2d is a wrapper temp -> safe to donate
        compiler_params=pltpu.CompilerParams(
            dimension_semantics=("parallel",)),
    )(seed_arr, x2d)

    if padded != total:
        out_flat = jnp.reshape(out2d, (padded,))[:total]
        return jnp.reshape(out_flat, orig_shape)
    return jnp.reshape(out2d, orig_shape)


if __name__ == "__main__":
    key = jax.random.PRNGKey(0)
    # NCHW activations, matching a typical conv feature map.
    x = jax.random.normal(key, (2, 4, 16, 16), dtype=jnp.float32)

    # Default module config: sigma=0.1, absolute noise, training mode.
    y = gaussian_noise(x, seed=0, sigma=0.1, use_relative=False, training=True)
    y = jax.block_until_ready(y)
    assert y.shape == x.shape and y.dtype == x.dtype

    # Relative-noise variant.
    y_rel = gaussian_noise(x, seed=1, sigma=0.1, use_relative=True, training=True)
    y_rel = jax.block_until_ready(y_rel)
    assert y_rel.shape == x.shape and y_rel.dtype == x.dtype

    # Eval mode / sigma=0 is the identity.
    y_eval = gaussian_noise(x, seed=2, sigma=0.1, training=False)
    assert bool(jnp.all(y_eval == x))

    # Sanity: added noise should have roughly std = sigma (loose check).
    noise = y - x
    std = float(jnp.std(noise))
    assert 0.04 < std < 0.25, f"unexpected noise std {std}"

    print("KERNEL_OK")
</pallas_src>

<mosaic_0001>
module attributes {stable_mosaic.version = 11 : i64} {
  func.func @_gaussian_noise_kernel_portable(%arg0: i32, %arg1: memref<1xi32, #tpu.memory_space<smem>>, %arg2: memref<8x256xf32, #tpu.memory_space<vmem>>, %arg3: memref<8x256xf32, #tpu.memory_space<vmem>>) attributes {dimension_semantics = [#tpu.dimension_semantics<parallel>], iteration_bounds = array<i64: 1>, scalar_prefetch = 0 : i64, scratch_operands = 0 : i64, tpu.core_type = #tpu.core_type<tc>, window_params = [{transform_indices = @transform_0, window_bounds = array<i64: 1>}, {transform_indices = @transform_1, window_bounds = array<i64: 8, 256>}, {transform_indices = @transform_2, window_bounds = array<i64: 8, 256>}]} {
    %0 = tpu.iota {dimensions = array<i32: 0>} : vector<8x256xi32>
    %1 = tpu.iota {dimensions = array<i32: 1>} : vector<8x256xi32>
    %c8_i32 = arith.constant 8 : i32
    %2 = arith.muli %arg0, %c8_i32 : i32
    %3 = vector.broadcast %2 : i32 to vector<8x256xi32>
    %4 = arith.addi %3, %0 : vector<8x256xi32>
    %c256_i32 = arith.constant 256 : i32
    %5 = vector.broadcast %c256_i32 : i32 to vector<8x256xi32>
    %6 = arith.muli %4, %5 : vector<8x256xi32>
    %7 = arith.addi %6, %1 : vector<8x256xi32>
    %c0 = arith.constant 0 : index
    %8 = memref.load %arg1[%c0] : memref<1xi32, #tpu.memory_space<smem>>
    %c-1640531527_i32 = arith.constant -1640531527 : i32
    %9 = arith.xori %8, %c-1640531527_i32 : i32
    %c16_i32 = arith.constant 16 : i32
    %10 = arith.shrui %9, %c16_i32 : i32
    %11 = arith.xori %9, %10 : i32
    %c2146121005_i32 = arith.constant 2146121005 : i32
    %12 = arith.muli %11, %c2146121005_i32 : i32
    %c15_i32 = arith.constant 15 : i32
    %13 = arith.shrui %12, %c15_i32 : i32
    %14 = arith.xori %12, %13 : i32
    %c-2073254261_i32 = arith.constant -2073254261 : i32
    %15 = arith.muli %14, %c-2073254261_i32 : i32
    %c16_i32_0 = arith.constant 16 : i32
    %16 = arith.shrui %15, %c16_i32_0 : i32
    %17 = arith.xori %15, %16 : i32
    %c2_i32 = arith.constant 2 : i32
    %18 = vector.broadcast %c2_i32 : i32 to vector<8x256xi32>
    %19 = arith.muli %7, %18 : vector<8x256xi32>
    %20 = vector.broadcast %17 : i32 to vector<8x256xi32>
    %21 = arith.xori %19, %20 : vector<8x256xi32>
    %c16_i32_1 = arith.constant 16 : i32
    %22 = vector.broadcast %c16_i32_1 : i32 to vector<8x256xi32>
    %23 = arith.shrui %21, %22 : vector<8x256xi32>
    %24 = arith.xori %21, %23 : vector<8x256xi32>
    %c2146121005_i32_2 = arith.constant 2146121005 : i32
    %25 = vector.broadcast %c2146121005_i32_2 : i32 to vector<8x256xi32>
    %26 = arith.muli %24, %25 : vector<8x256xi32>
    %c15_i32_3 = arith.constant 15 : i32
    %27 = vector.broadcast %c15_i32_3 : i32 to vector<8x256xi32>
    %28 = arith.shrui %26, %27 : vector<8x256xi32>
    %29 = arith.xori %26, %28 : vector<8x256xi32>
    %c-2073254261_i32_4 = arith.constant -2073254261 : i32
    %30 = vector.broadcast %c-2073254261_i32_4 : i32 to vector<8x256xi32>
    %31 = arith.muli %29, %30 : vector<8x256xi32>
    %c16_i32_5 = arith.constant 16 : i32
    %32 = vector.broadcast %c16_i32_5 : i32 to vector<8x256xi32>
    %33 = arith.shrui %31, %32 : vector<8x256xi32>
    %34 = arith.xori %31, %33 : vector<8x256xi32>
    %c2_i32_6 = arith.constant 2 : i32
    %35 = vector.broadcast %c2_i32_6 : i32 to vector<8x256xi32>
    %36 = arith.muli %7, %35 : vector<8x256xi32>
    %c1_i32 = arith.constant 1 : i32
    %37 = vector.broadcast %c1_i32 : i32 to vector<8x256xi32>
    %38 = arith.addi %36, %37 : vector<8x256xi32>
    %39 = vector.broadcast %17 : i32 to vector<8x256xi32>
    %40 = arith.xori %38, %39 : vector<8x256xi32>
    %c16_i32_7 = arith.constant 16 : i32
    %41 = vector.broadcast %c16_i32_7 : i32 to vector<8x256xi32>
    %42 = arith.shrui %40, %41 : vector<8x256xi32>
    %43 = arith.xori %40, %42 : vector<8x256xi32>
    %c2146121005_i32_8 = arith.constant 2146121005 : i32
    %44 = vector.broadcast %c2146121005_i32_8 : i32 to vector<8x256xi32>
    %45 = arith.muli %43, %44 : vector<8x256xi32>
    %c15_i32_9 = arith.constant 15 : i32
    %46 = vector.broadcast %c15_i32_9 : i32 to vector<8x256xi32>
    %47 = arith.shrui %45, %46 : vector<8x256xi32>
    %48 = arith.xori %45, %47 : vector<8x256xi32>
    %c-2073254261_i32_10 = arith.constant -2073254261 : i32
    %49 = vector.broadcast %c-2073254261_i32_10 : i32 to vector<8x256xi32>
    %50 = arith.muli %48, %49 : vector<8x256xi32>
    %c16_i32_11 = arith.constant 16 : i32
    %51 = vector.broadcast %c16_i32_11 : i32 to vector<8x256xi32>
    %52 = arith.shrui %50, %51 : vector<8x256xi32>
    %53 = arith.xori %50, %52 : vector<8x256xi32>
    %c8_i32_12 = arith.constant 8 : i32
    %54 = vector.broadcast %c8_i32_12 : i32 to vector<8x256xi32>
    %55 = arith.shrui %34, %54 : vector<8x256xi32>
    %56 = arith.uitofp %55 : vector<8x256xi32> to vector<8x256xf32>
    %cst = arith.constant 1.000000e+00 : f32
    %57 = vector.broadcast %cst : f32 to vector<8x256xf32>
    %58 = arith.addf %56, %57 : vector<8x256xf32>
    %cst_13 = arith.constant 5.96046448E-8 : f32
    %59 = vector.broadcast %cst_13 : f32 to vector<8x256xf32>
    %60 = arith.mulf %58, %59 : vector<8x256xf32>
    %c8_i32_14 = arith.constant 8 : i32
    %61 = vector.broadcast %c8_i32_14 : i32 to vector<8x256xi32>
    %62 = arith.shrui %53, %61 : vector<8x256xi32>
    %63 = arith.uitofp %62 : vector<8x256xi32> to vector<8x256xf32>
    %cst_15 = arith.constant 5.96046448E-8 : f32
    %64 = vector.broadcast %cst_15 : f32 to vector<8x256xf32>
    %65 = arith.mulf %63, %64 : vector<8x256xf32>
    %66 = math.log %60 : vector<8x256xf32>
    %cst_16 = arith.constant -2.000000e+00 : f32
    %67 = vector.broadcast %cst_16 : f32 to vector<8x256xf32>
    %68 = arith.mulf %67, %66 : vector<8x256xf32>
    %69 = math.sqrt %68 : vector<8x256xf32>
    %cst_17 = arith.constant 6.28318548 : f32
    %70 = vector.broadcast %cst_17 : f32 to vector<8x256xf32>
    %71 = arith.mulf %70, %65 : vector<8x256xf32>
    %72 = math.cos %71 : vector<8x256xf32>
    %73 = arith.mulf %69, %72 : vector<8x256xf32>
    %c0_18 = arith.constant 0 : index
    %c0_19 = arith.constant 0 : index
    %74 = vector.load %arg2[%c0_18, %c0_19] : memref<8x256xf32, #tpu.memory_space<vmem>>, vector<8x256xf32>
    %cst_20 = arith.constant 1.000000e-01 : f32
    %75 = vector.broadcast %cst_20 : f32 to vector<8x256xf32>
    %76 = arith.mulf %73, %75 : vector<8x256xf32>
    %77 = arith.addf %74, %76 : vector<8x256xf32>
    %c0_21 = arith.constant 0 : index
    %c0_22 = arith.constant 0 : index
    %78 = vector.load %arg3[%c0_21, %c0_22] : memref<8x256xf32, #tpu.memory_space<vmem>>, vector<8x256xf32>
    tpu.vector_store %arg3[%c0_21, %c0_22], %77 {strides = array<i32>} : memref<8x256xf32, #tpu.memory_space<vmem>>, vector<8x256xf32>,
    return
  }
  func.func @transform_0(%arg0: i32) -> i32 {
    %c0_i32 = arith.constant 0 : i32
    %c0_i32_0 = arith.constant 0 : i32
    return %c0_i32 : i32
  }
  func.func @transform_1(%arg0: i32) -> (i32, i32) {
    %c0_i32 = arith.constant 0 : i32
    %c0_i32_0 = arith.constant 0 : i32
    return %arg0, %c0_i32 : i32, i32
  }
  func.func @transform_2(%arg0: i32) -> (i32, i32) {
    %c0_i32 = arith.constant 0 : i32
    %c0_i32_0 = arith.constant 0 : i32
    return %arg0, %c0_i32 : i32, i32
  }
}

</mosaic_0001>

<bundles_post_ra>
// kernel: tpu_custom_call.1
= control target key start
LH: loop header
LB: loop body
LE: loop exit
PB: predicated region body
PF: predicated region fallthrough
CT: control target
= control target key end

     0   :  { %8 = vsyncpa [#allocation4], 0  ;;  %s809_s0 = inlined_call_operand.<no memory space> [shape: s32[1], index: 0, kind: input, shape index: {}]   ;;  %s810_s1 = inlined_call_operand.hbm [shape: f32[8,256], index: 1, kind: input, shape index: {}, may-alias: {1,2}]   ;;  %s811_s2 = inlined_call_operand.hbm [shape: f32[8,256], index: 2, kind: output, shape index: {}, may-alias: {1,2}]  }
   0x1   :  { %9 = vsyncpa [#allocation5], 0  ;;  %s17_s11 = sshll.u32 %s810_s1, 4  ;;  %s565_s12 = smov [#allocation3]   ;;  %s18_s11 = int_to_ptr.hbm [resolvable:$true] %s17_s11 }
   0x2   :  { %s19_s13 = sshll.u32 %s565_s12, 4  ;;  %s20_s13 = int_to_ptr.vmem [resolvable:$true] %s19_s13 }
   0x3   :  { %22 = dma.hbm_to_vmem [thread:$0]  %s18_s11, 256, %s20_s13, [#allocation4]  }
   0x4   :  { %561 = dma.done.wait [#allocation4], 256  }
   0x5   :  { %562 = vsyncadd [#allocation4], 4294967040  ;;  %v27_v0 = vlaneseq  ;;  %s39_s16 = sxor.u32 2654435769, %s809_s0  ;;  %s573_s0 = smov [#allocation6]  }
   0x6   :  { %s40_s17 = sshrl.u32 %s39_s16, 16  ;;  %s478_s24 = sshll.u32 %s573_s0, 4  ;;  %s479_s24 = int_to_ptr.vmem [resolvable:$true] %s478_s24 }
   0x7   :  { %v28_v1 = vshrl.u32 %v27_v0, 7  ;;  %v30_v2 = vand.u32 127, %v27_v0  ;;  %s41_s18 = sxor.u32 %s40_s17, %s39_s16  ;;  %s480_s27 = sshll.u32 %s811_s2, 4  ;;  %s481_s27 = int_to_ptr.hbm [resolvable:$true] %s480_s27 }
   0x8   :  { %s42_s19 = smul.u32 2146121005, %s41_s18 }
   0x9   :  { %v31_v3 = vadd.s32 128, %v30_v2  ;;  %v35_v4 = vmul.u32 256, %v28_v1 }
   0xa   :  { %s43_s1 = sshrl.u32 %s42_s19, 15 }
   0xb   :  { %v36_v5 = vadd.s32 %v35_v4, %v30_v2  ;;  %v37_v6 = vadd.s32 %v35_v4, %v31_v3  ;;  %s44_s20 = sxor.u32 %s43_s1, %s42_s19 }
   0xc   :  { %s45_s21 = smul.u32 2221713035, %s44_s20 }
   0xd   :  { %v48_v7 = vmul.u32 2, %v36_v5  ;;  %v49_v8 = vmul.u32 2, %v37_v6 }
   0xe   :  { %s46_s22 = sshrl.u32 %s45_s21, 16 }
   0xf   :  { %s47_s23 = sxor.u32 %s46_s22, %s45_s21  ;;  %v69_v9 = vadd.s32 1, %v48_v7  ;;  %v70_v10 = vadd.s32 1, %v49_v8 }
  0x10   :  { %v50_v11 = vstv %s47_s23 }
  0x11   :  { %v51_v12 = vxor.u32 %v50_v11, %v48_v7  ;;  %v52_v13 = vxor.u32 %v50_v11, %v49_v8  ;;  %v71_v14 = vxor.u32 %v69_v9, %v50_v11  ;;  %v72_v15 = vxor.u32 %v70_v10, %v50_v11 }
  0x13   :  { %v53_v16 = vshrl.u32 %v51_v12, 16  ;;  %v73_v17 = vshrl.u32 %v71_v14, 16  ;;  %v74_v18 = vshrl.u32 %v72_v15, 16  ;;  %v54_v45 = vshrl.u32 %v52_v13, 16 }
  0x15   :  { %v55_v19 = vxor.u32 %v53_v16, %v51_v12  ;;  %v75_v20 = vxor.u32 %v73_v17, %v71_v14  ;;  %v76_v21 = vxor.u32 %v74_v18, %v72_v15  ;;  %v56_v53 = vxor.u32 %v54_v45, %v52_v13 }
  0x17   :  { %v57_v22 = vmul.u32 2146121005, %v55_v19  ;;  %v77_v23 = vmul.u32 2146121005, %v75_v20  ;;  %v78_v24 = vmul.u32 2146121005, %v76_v21 }
  0x18   :  { %v58_v59 = vmul.u32 2146121005, %v56_v53 }
  0x19   :  { %v59_v25 = vshrl.u32 %v57_v22, 15  ;;  %v79_v26 = vshrl.u32 %v77_v23, 15  ;;  %v80_v27 = vshrl.u32 %v78_v24, 15 }
  0x1a   :  { %v60_v0 = vshrl.u32 %v58_v59, 15 }
  0x1b   :  { %v81_v28 = vxor.u32 %v79_v26, %v77_v23  ;;  %v82_v29 = vxor.u32 %v80_v27, %v78_v24  ;;  %v61_v30 = vxor.u32 %v59_v25, %v57_v22  ;;  %v566_v22 = vmov 683565275  }
  0x1c   :  { %v62_v6 = vxor.u32 %v60_v0, %v58_v59  ;;  %v567_v24 = vmov 2475754826   ;;  %v568_v26 = vmov 2131351028  }
  0x1d   :  { %v83_v31 = vmul.u32 2221713035, %v81_v28  ;;  %v84_v32 = vmul.u32 2221713035, %v82_v29  ;;  %v63_v35 = vmul.u32 2221713035, %v61_v30 }
  0x1e   :  { %v64_v12 = vmul.u32 2221713035, %v62_v6  ;;  %v569_v29 = vmov 2102212464  }
  0x1f   :  { %v85_v33 = vshrl.u32 %v83_v31, 16  ;;  %v86_v34 = vshrl.u32 %v84_v32, 16  ;;  %v65_v40 = vshrl.u32 %v63_v35, 16 }
  0x20   :  { %v66_v18 = vshrl.u32 %v64_v12, 16 }
  0x21   :  { %v87_v36 = vxor.u32 %v85_v33, %v83_v31  ;;  %v88_v37 = vxor.u32 %v86_v34, %v84_v32  ;;  %v67_v50 = vxor.u32 %v65_v40, %v63_v35  ;;  %v570_v31 = vmov 920167782  }
  0x23   :  { %v107_v38 = vshrl.u32 %v87_v36, 8  ;;  %v108_v39 = vshrl.u32 %v88_v37, 8  ;;  %v89_v56 = vshrl.u32 %v67_v50, 8 }
  0x25   :  { %v109_v41 = vshrl.u32 %v107_v38, 16  ;;  %v110_v42 = vand.u32 65535, %v107_v38  ;;  %v115_v43 = vshrl.u32 %v108_v39, 16  ;;  %v116_v44 = vand.u32 65535, %v108_v39 }
  0x26   :  { %v91_v61 = vshrl.u32 %v89_v56, 16  ;;  %v92_v2 = vand.u32 65535, %v89_v56  ;;  %v571_v38 = vmov 1326507024  }
  0x27   :  { %v111_v46 = vcvt.s32.f32 %v109_v41  ;;  %v113_v47 = vcvt.s32.f32 %v110_v42  ;;  %v117_v48 = vcvt.s32.f32 %v115_v43  ;;  %v119_v49 = vcvt.s32.f32 %v116_v44 }
  0x28   :  { %v93_v3 = vcvt.s32.f32 %v91_v61  ;;  %v95_v10 = vcvt.s32.f32 %v92_v2  ;;  %v619_v41 = vxor.u32 %v66_v18, %v64_v12 }
  0x29   :  { %v112_v51 = vmul.f32 65536.0, %v111_v46  ;;  %v118_v52 = vmul.f32 65536.0, %v117_v48 }
  0x2a   :  { %v94_v9 = vmul.f32 65536.0, %v93_v3  ;;  %v90_v3 = vshrl.u32 %v619_v41, 8 }
  0x2b   :  { %v114_v54 = vadd.f32 %v113_v47, %v112_v51  ;;  %v120_v55 = vadd.f32 %v119_v49, %v118_v52 }
  0x2c   :  { %v96_v15 = vadd.f32 %v95_v10, %v94_v9 }
  0x2d   :  { %v121_v57 = vmul.f32 5.9604645e-08, %v114_v54  ;;  %v122_v58 = vmul.f32 5.9604645e-08, %v120_v55 }
  0x2e   :  { %v103_v28 = vadd.f32 1.0, %v96_v15 }
  0x2f   :  { %v595_v60 = vmul.f32 6.2831855, %v121_v57  ;;  %v597_v62 = vmul.f32 6.2831855, %v122_v58 }
  0x30   :  { %v105_v49 = vmul.f32 5.9604645e-08, %v103_v28 }
  0x31   :  { %v158_v63 = vand.u32 2139095040, %v595_v60  ;;  %v312_v5 = vand.u32 2139095040, %v597_v62  ;;  %v155_v7 = vand.u32 2147483647, %v595_v60  ;;  %v309_v48 = vand.u32 2147483647, %v597_v62 }
  0x32   :  { %505 = vlog2.f32 %v105_v49 }
  0x33   :  { %v159_v1 = vshrl.u32 %v158_v63, 23  ;;  %v313_v11 = vshrl.u32 %v312_v5, 23  ;;  %v162_v13 = vand.u32 8388607, %v155_v7  ;;  %v642_v2 = vand.u32 8388607, %v309_v48 }
  0x35   :  { %v490_v4 = vadd.s32 4294967169, %v159_v1  ;;  %v493_v17 = vadd.s32 4294967169, %v313_v11  ;;  %v163_v19 = vor.u32 8388608, %v162_v13 }
  0x37   :  { %v165_v8 = vadd.s32 1, %v490_v4  ;;  %v319_v36 = vadd.s32 1, %v493_v17  ;;  %v617_v40 = vshll.u32 %v163_v19, 8  ;;  %v317_v17 = vor.u32 8388608, %v642_v2 }
  0x39   :  { %vm166_vm0 = vcmp.gt.s32.totalorder %v165_v8, 0  ;;  %vm320_vm5 = vcmp.gt.s32.totalorder %v319_v36, 0  ;;  %v204_v52 = vand.u32 65535, %v617_v40  ;;  %v205_v56 = vshrl.u32 %v617_v40, 16 }
  0x3a   :  { %v167_v14 = vsel %vm166_vm0, %v165_v8, 0  ;;  %v321_v61 = vsel %vm320_vm5, %v319_v36, 0 }
  0x3b   :  { %v169_v16 = vand.u32 31, %v167_v14  ;;  %v604_v20 = vshrl.u32 %v167_v14, 5  ;;  %v323_v10 = vand.u32 31, %v321_v61 }
  0x3d   :  { %v170_v21 = vsub.s32 32, %v169_v16  ;;  %v172_v23 = vshll.u32 %v566_v22, %v169_v16  ;;  %v175_v25 = vshll.u32 %v567_v24, %v169_v16  ;;  %v178_v27 = vshll.u32 %v568_v26, %v169_v16 }
  0x3e   :  { %v181_v30 = vshll.u32 %v569_v29, %v169_v16  ;;  %v184_v32 = vshll.u32 %v570_v31, %v169_v16  ;;  %vm187_vm1 = vcmp.lt.s32.totalorder %v604_v20, 1  ;;  %vm189_vm2 = vcmp.lt.s32.totalorder %v604_v20, 3 }
  0x3f   :  { %v173_v33 = vshrl.u32 %v567_v24, %v170_v21  ;;  %v176_v34 = vshrl.u32 %v568_v26, %v170_v21  ;;  %v179_v35 = vshrl.u32 %v569_v29, %v170_v21  ;;  %v182_v37 = vshrl.u32 %v570_v31, %v170_v21 }
  0x40   :  { %v185_v39 = vshrl.u32 %v571_v38, %v170_v21  ;;  %vm190_vm3 = vcmp.lt.s32.totalorder %v604_v20, 4  ;;  %vm188_vm4 = vcmp.lt.s32.totalorder %v604_v20, 2  ;;  %v171_v53 = vshrl.u32 %v566_v22, %v170_v21 }
  0x41   :  { %v174_v42 = vor.u32 %v173_v33, %v172_v23  ;;  %v177_v43 = vor.u32 %v176_v34, %v175_v25  ;;  %v180_v44 = vor.u32 %v179_v35, %v178_v27  ;;  %v183_v45 = vor.u32 %v182_v37, %v181_v30 }
  0x42   :  { %v186_v46 = vor.u32 %v185_v39, %v184_v32  ;;  %v650_v23 = vshrl.u32 %v321_v61, 5  ;;  %v656_v30 = vsub.s32 32, %v323_v10  ;;  %v572_v35 = vmov 0  }
  0x43   :  { %v195_v47 = vsel %vm187_vm1, %v174_v42, %v177_v43  ;;  %v196_v50 = vsel %vm190_vm3, %v183_v45, 920167782  ;;  %v199_v51 = vsel %vm187_vm1, %v177_v43, %v180_v44  ;;  %v192_v57 = vsel %vm190_vm3, %v180_v44, 2102212464 }
  0x44   :  { %v197_v54 = vsel %vm189_vm2, %v180_v44, %v196_v50  ;;  %v200_v55 = vsel %vm190_vm3, %v186_v46, 1326507024  ;;  %v191_v6 = vsel %vm187_vm1, %v171_v53, %v174_v42  ;;  %v193_v8 = vsel %vm189_vm2, %v177_v43, %v192_v57  ;;  %v506_v44 = vpop.eup %505 }
  0x45   :  { %v198_v58 = vsel %vm188_vm4, %v195_v47, %v197_v54  ;;  %v201_v59 = vsel %vm189_vm2, %v183_v45, %v200_v55  ;;  %v654_v25 = vsel %vm188_vm4, %v191_v6, %v193_v8  ;;  %v329_v54 = vshll.u32 %v567_v24, %v323_v10 }
  0x46   :  { %v202_v63 = vsel %vm188_vm4, %v199_v51, %v201_v59  ;;  %v228_v0 = vand.u32 65535, %v198_v58  ;;  %v229_v1 = vshrl.u32 %v198_v58, 16  ;;  %v326_v51 = vshll.u32 %v566_v22, %v323_v10 }
  0x47   :  { %v206_v4 = vand.u32 65535, %v202_v63  ;;  %v207_v5 = vshrl.u32 %v202_v63, 16  ;;  %v330_v55 = vshrl.u32 %v568_v26, %v656_v30  ;;  %v333_v59 = vshrl.u32 %v569_v29, %v656_v30 }
  0x48   :  { %v231_v9 = vmul.u32 %v229_v1, %v204_v52  ;;  %v232_v14 = vmul.u32 %v228_v0, %v205_v56  ;;  %v230_v15 = vmul.u32 %v228_v0, %v204_v52  ;;  %v233_v28 = vmul.u32 %v229_v1, %v205_v56 }
  0x49   :  { %v208_v11 = vmul.u32 %v206_v4, %v204_v52  ;;  %v209_v12 = vmul.u32 %v207_v5, %v204_v52  ;;  %v210_v13 = vmul.u32 %v206_v4, %v205_v56  ;;  %v211_v18 = vmul.u32 %v207_v5, %v205_v56 }
  0x4a   :  { %v234_v16 = vshll.u32 %v231_v9, 16  ;;  %v236_v34 = vshll.u32 %v232_v14, 16  ;;  %v235_v37 = vshrl.u32 %v231_v9, 16  ;;  %v237_v43 = vshrl.u32 %v232_v14, 16 }
  0x4b   :  { %v212_v19 = vshll.u32 %v209_v12, 16  ;;  %v214_v21 = vshll.u32 %v210_v13, 16  ;;  %v213_v27 = vshrl.u32 %v209_v12, 16  ;;  %v215_v32 = vshrl.u32 %v210_v13, 16 }
  0x4c   :  { %vm238_vm7 = vc.u32 %v230_v15, %v234_v16  ;;  %v240_v39 = vadd.s32 %v234_v16, %v230_v15  ;;  %v327_v52 = vshrl.u32 %v567_v24, %v656_v30  ;;  %v332_v56 = vshll.u32 %v568_v26, %v323_v10 }
  0x4d   :  { %vm216_vm6 = vc.u32 %v208_v11, %v212_v19  ;;  %v218_v33 = vadd.s32 %v212_v19, %v208_v11  ;;  %v239_v20 = vsel %vm238_vm7, 1, %v572_v35  ;;  %v335_v61 = vshll.u32 %v569_v29, %v323_v10 }
  0x4e   :  { %v217_v36 = vsel %vm216_vm6, 1, %v572_v35  ;;  %v241_v46 = vadd.s32 %v239_v20, %v233_v28  ;;  %vm242_vm9 = vc.u32 %v240_v39, %v236_v34  ;;  %v661_v47 = vadd.s32 %v240_v39, %v236_v34 }
  0x4f   :  { %v219_v42 = vadd.s32 %v217_v36, %v211_v18  ;;  %vm220_vm8 = vc.u32 %v218_v33, %v214_v21  ;;  %v243_v50 = vsel %vm242_vm9, 1, %v572_v35  ;;  %v671_v58 = vor.u32 %v327_v52, %v326_v51 }
  0x50   :  { %v221_v45 = vsel %vm220_vm8, 1, %v572_v35  ;;  %v245_v53 = vadd.s32 %v243_v50, %v241_v46  ;;  %v676_v0 = vor.u32 %v330_v55, %v329_v54  ;;  %v336_v1 = vshrl.u32 %v570_v31, %v656_v30 }
  0x51   :  { %v223_v49 = vadd.s32 %v221_v45, %v219_v42  ;;  %v338_v24 = vshll.u32 %v570_v31, %v323_v10  ;;  %v683_v4 = vor.u32 %v333_v59, %v332_v56  ;;  %v339_v26 = vshrl.u32 %v571_v38, %v656_v30 }
  0x52   :  { %v246_v63 = vadd.s32 %v245_v53, %v235_v37  ;;  %vm341_vm10 = vcmp.lt.s32.totalorder %v650_v23, 1  ;;  %v97_v29 = vshrl.u32 %v90_v3, 16  ;;  %v248_v6 = vmul.u32 %v617_v40, %v654_v25 }
  0x53   :  { %v224_v57 = vadd.s32 %v223_v49, %v213_v27  ;;  %v337_v8 = vor.u32 %v336_v1, %v335_v61  ;;  %v340_v31 = vor.u32 %v339_v26, %v338_v24  ;;  %vm343_vm12 = vcmp.lt.s32.totalorder %v650_v23, 3 }
  0x54   :  { %v247_v5 = vadd.s32 %v246_v63, %v237_v43  ;;  %vm344_vm13 = vcmp.lt.s32.totalorder %v650_v23, 4  ;;  %vm342_vm14 = vcmp.lt.s32.totalorder %v650_v23, 2  ;;  %v349_v38 = vsel %vm341_vm10, %v671_v58, %v676_v0 }
  0x55   :  { %v681_v2 = vadd.s32 %v224_v57, %v215_v32  ;;  %v701_v10 = vshll.u32 %v317_v17, 8  ;;  %v98_v40 = vand.u32 65535, %v90_v3  ;;  %v350_v11 = vsel %vm344_vm13, %v337_v8, 920167782 }
  0x56   :  { %v251_v9 = vadd.s32 1, %v247_v5  ;;  %v353_v12 = vsel %vm341_vm10, %v676_v0, %v683_v4  ;;  %v354_v13 = vsel %vm344_vm13, %v340_v31, 1326507024  ;;  %v99_v14 = vcvt.s32.f32 %v97_v29 }
  0x57   :  { %vm250_vm11 = vc.u32 %v681_v2, %v661_v47  ;;  %v351_v16 = vsel %vm343_vm12, %v683_v4, %v350_v11  ;;  %v355_v41 = vsel %vm343_vm12, %v337_v8, %v354_v13  ;;  %v358_v19 = vand.u32 65535, %v701_v10 }
  0x58   :  { %v252_v15 = vsel %vm250_vm11, %v251_v9, %v247_v5  ;;  %v352_v17 = vsel %vm342_vm14, %v349_v38, %v351_v16  ;;  %v356_v18 = vsel %vm342_vm14, %v353_v12, %v355_v41  ;;  %v359_v21 = vshrl.u32 %v701_v10, 16 }
  0x59   :  { %v253_v3 = vadd.s32 %v252_v15, %v248_v6  ;;  %v360_v25 = vand.u32 65535, %v356_v18  ;;  %v361_v28 = vshrl.u32 %v356_v18, 16  ;;  %v382_v32 = vand.u32 65535, %v352_v17 }
  0x5a   :  { %v383_v33 = vshrl.u32 %v352_v17, 16  ;;  %v100_v34 = vmul.f32 65536.0, %v99_v14  ;;  %v101_v36 = vcvt.s32.f32 %v98_v40  ;;  %v124_v37 = vmul.f32 0.6931472, %v506_v44 }
  0x5b   :  { %v254_v27 = vadd.s32 536870912, %v253_v3  ;;  %v364_v39 = vmul.u32 %v360_v25, %v359_v21  ;;  %v362_v43 = vmul.u32 %v360_v25, %v358_v19  ;;  %v363_v20 = vmul.u32 %v361_v28, %v358_v19 }
  0x5c   :  { %v384_v45 = vmul.u32 %v382_v32, %v358_v19  ;;  %v385_v46 = vmul.u32 %v383_v33, %v358_v19  ;;  %v386_v49 = vmul.u32 %v382_v32, %v359_v21  ;;  %v365_v51 = vmul.u32 %v361_v28, %v359_v21 }
  0x5d   :  { %v724_v42 = vshrl.u32 %v254_v27, 30  ;;  %v366_v52 = vshll.u32 %v363_v20, 16  ;;  %v368_v53 = vshll.u32 %v364_v39, 16  ;;  %v102_v54 = vadd.f32 %v101_v36, %v100_v34 }
  0x5e   :  { %v727_v55 = vmul.f32 -2.0, %v124_v37  ;;  %v388_v56 = vshll.u32 %v385_v46, 16  ;;  %v387_v59 = vmul.u32 %v383_v33, %v359_v21  ;;  %v367_v61 = vshrl.u32 %v363_v20, 16 }
  0x5f   :  { %v256_v50 = vshll.u32 %v724_v42, 30  ;;  %vm370_vm15 = vc.u32 %v362_v43, %v366_v52  ;;  %v372_v44 = vadd.s32 %v366_v52, %v362_v43  ;;  %v390_v1 = vshll.u32 %v386_v49, 16 }
  0x60   :  { %v371_v63 = vsel %vm370_vm15, 1, %v572_v35  ;;  %vm392_vm0 = vc.u32 %v384_v45, %v388_v56  ;;  %v325_v29 = vshrl.u32 %v566_v22, %v656_v30  ;;  %v394_v8 = vadd.s32 %v388_v56, %v384_v45 }
  0x61   :  { %v257_v57 = vsub.s32 %v253_v3, %v256_v50  ;;  %v373_v26 = vadd.s32 %v371_v63, %v365_v51  ;;  %vm374_vm2 = vc.u32 %v372_v44, %v368_v53  ;;  %v393_v6 = vsel %vm392_vm0, 1, %v572_v35 }
  0x62   :  { %v375_v5 = vsel %vm374_vm2, 1, %v572_v35  ;;  %v346_v9 = vsel %vm344_vm13, %v683_v4, 2102212464  ;;  %v395_v40 = vadd.s32 %v393_v6, %v387_v59  ;;  %v369_v12 = vshrl.u32 %v364_v39, 16 }
  0x63   :  { %vm258_vm1 = vcmp.lt.s32.totalorder %v257_v57, 0  ;;  %v259_v24 = vsub.s32 0, %v257_v57  ;;  %v377_v38 = vadd.s32 %v375_v5, %v373_v26  ;;  %v389_v13 = vshrl.u32 %v385_v46, 16 }
  0x64   :  { %vm396_vm3 = vc.u32 %v394_v8, %v390_v1  ;;  %v345_v30 = vsel %vm341_vm10, %v325_v29, %v671_v58  ;;  %v347_v16 = vsel %vm343_vm12, %v676_v0, %v346_v9  ;;  %v104_v4 = vadd.f32 1.0, %v102_v54 }
  0x65   :  { %v260_v31 = vsel %vm258_vm1, %v259_v24, %v257_v57  ;;  %v378_v14 = vadd.s32 %v377_v38, %v367_v61  ;;  %v397_v15 = vsel %vm396_vm3, 1, %v572_v35  ;;  %507 = vrsqrt.f32 %v727_v55 }
  0x66   :  { %v261_v11 = vclz %v260_v31  ;;  %v399_v41 = vadd.s32 %v397_v15, %v395_v40  ;;  %v249_v3 = vadd.s32 %v661_v47, %v681_v2  ;;  %v391_v17 = vshrl.u32 %v386_v49, 16 }
  0x67   :  { %v379_v18 = vadd.s32 %v378_v14, %v369_v12  ;;  %v398_v35 = vadd.s32 %v394_v8, %v390_v1  ;;  %v348_v58 = vsel %vm342_vm14, %v345_v30, %v347_v16  ;;  %v106_v0 = vmul.f32 5.9604645e-08, %v104_v4 }
  0x68   :  { %v491_v22 = vadd.s32 4294967294, %v261_v11  ;;  %v400_v19 = vadd.s32 %v399_v41, %v389_v13  ;;  %v402_v36 = vmul.u32 %v701_v10, %v348_v58  ;;  %vm157_vm6 = vcmp.lt.s32.totalorder %v595_v60, 0 }
  0x69   :  { %vm404_vm5 = vc.u32 %v379_v18, %v398_v35  ;;  %509 = vlog2.f32 %v106_v0  ;;  %vm756_vm7 = vcmp.le.f32.partialorder %v155_v7, 0.7853982  ;;  %v279_v1 = vsub.s32 4, %v724_v42 }
  0x6a   :  { %vm492_vm4 = vcmp.lt.s32.totalorder %v491_v22, 0  ;;  %v401_v32 = vadd.s32 %v400_v19, %v391_v17  ;;  %v403_v30 = vadd.s32 %v398_v35, %v379_v18  ;;  %vm136_vm10 = vcmp.eq.f32.partialorder %v727_v55, inf }
  0x6b   :  { %v264_v21 = vsel %vm492_vm4, 0, %v491_v22  ;;  %v508_v47 = vpop.eup %507  ;;  %v280_v9 = vsel %vm157_vm6, %v279_v1, %v724_v42  ;;  %vm138_vm12 = vcmp.eq.f32.partialorder %v727_v55, 0.0  ;;  %vm298_vm15 = vweird.f32 %v595_v60 }
  0x6c   :  { %v265_v25 = vsub.s32 32, %v264_v21  ;;  %v266_v27 = vshll.u32 %v257_v57, %v264_v21  ;;  %v269_v28 = vsub.s32 4294967266, %v264_v21  ;;  %v405_v2 = vadd.s32 1, %v401_v32 }
  0x6d   :  { %v130_v46 = vmul.f32 %v508_v47, %v727_v55  ;;  %v282_v13 = vsel %vm756_vm7, 0, %v280_v9  ;;  %vm311_vm0 = vcmp.lt.s32.totalorder %v597_v62, 0  ;;  %vm785_vm1 = vcmp.le.f32.partialorder %v309_v48, 0.7853982 }
  0x6e   :  { %v267_v33 = vshrl.u32 %v249_v3, %v265_v25  ;;  %v270_v34 = vadd.s32 127, %v269_v28  ;;  %v406_v43 = vsel %vm404_vm5, %v405_v2, %v401_v32  ;;  %v299_v3 = vand.u32 3, %v282_v13 }
  0x6f   :  { %v407_v23 = vadd.s32 %v406_v43, %v402_v36  ;;  %v131_v53 = vmul.f32 %v508_v47, %v130_v46  ;;  %v510_v10 = vpop.eup %509 }
  0x70   :  { %v268_v37 = vor.u32 %v267_v33, %v266_v27  ;;  %v271_v39 = vshll.u32 %v270_v34, 23  ;;  %v126_v61 = vmul.f32 0.6931472, %v510_v10  ;;  %vm304_vm11 = vcmp.eq.s32.totalorder %v299_v3, 2 }
  0x71   :  { %v408_v50 = vadd.s32 536870912, %v407_v23  ;;  %v132_v63 = vmul.f32 0.5, %v131_v53  ;;  %v139_v34 = vand.u32 2147483648, %v727_v55  ;;  %vm301_vm13 = vcmp.eq.s32.totalorder %v299_v3, 0 }
  0x72   :  { %v272_v20 = vor.u32 4788187, %v271_v39  ;;  %v275_v45 = vcvt.s32.f32 %v268_v37  ;;  %v767_v8 = vmul.f32 -2.0, %v126_v61  ;;  %vm300_vm14 = vcmp.lt.s32.totalorder %v299_v3, 2 }
  0x73   :  { %v751_v52 = vshrl.u32 %v408_v50, 30  ;;  %v133_v31 = vsub.f32 1.5, %v132_v63 }
  0x74   :  { %v273_v49 = vand.u32 2147483647, %v272_v20  ;;  %511 = vrsqrt.f32 %v767_v8  ;;  %vm148_vm2 = vcmp.eq.f32.partialorder %v767_v8, inf  ;;  %vm150_vm4 = vcmp.eq.f32.partialorder %v767_v8, 0.0 }
  0x75   :  { %v410_v57 = vshll.u32 %v751_v52, 30  ;;  %v134_v22 = vmul.f32 %v508_v47, %v133_v31  ;;  %v433_v61 = vsub.s32 4, %v751_v52 }
  0x76   :  { %v276_v51 = vmul.f32 %v275_v45, %v273_v49 }
  0x77   :  { %v411_v59 = vsub.s32 %v407_v23, %v410_v57  ;;  %v135_v25 = vmul.f32 %v134_v22, %v727_v55  ;;  %v465_v57 = vld [vmem:[#allocation3] sm:$0xff] }
  0x78   :  { %v277_v56 = vxor.u32 2147483648, %v276_v51 }
  0x79   :  { %vm412_vm8 = vcmp.lt.s32.totalorder %v411_v59, 0  ;;  %v413_v7 = vsub.s32 0, %v411_v59  ;;  %v137_v2 = vsel %vm136_vm10, %v727_v55, %v135_v25 }
  0x7a   :  { %v278_v44 = vsel %vm157_vm6, %v277_v56, %v276_v51  ;;  %v512_v33 = vpop.eup %511  ;;  %v140_v46 = vsel %vm138_vm12, %v139_v34, %v137_v2 }
  0x7b   :  { %v281_v24 = vsel %vm756_vm7, %v595_v60, %v278_v44  ;;  %v414_v6 = vsel %vm412_vm8, %v413_v7, %v411_v59  ;;  %v142_v43 = vmul.f32 %v512_v33, %v767_v8  ;;  %vm452_vm7 = vweird.f32 %v597_v62 }
  0x7c   :  { %v283_v26 = vmul.f32 %v281_v24, %v281_v24  ;;  %v415_v38 = vclz %v414_v6 }
  0x7d   :  { %v143_v53 = vmul.f32 %v512_v33, %v142_v43 }
  0x7e   :  { %v284_v29 = vmul.f32 -0.001358992, %v283_v26  ;;  %v291_v5 = vmul.f32 -0.00019511016, %v283_v26  ;;  %v494_v12 = vadd.s32 4294967294, %v415_v38 }
  0x80   :  { %v285_v40 = vadd.f32 0.041655596, %v284_v29  ;;  %v292_v11 = vadd.f32 0.008332121, %v291_v5  ;;  %vm495_vm9 = vcmp.lt.s32.totalorder %v494_v12, 0  ;;  %v434_v29 = vsel %vm311_vm0, %v433_v61, %v751_v52 }
  0x81   :  { %v418_v4 = vsel %vm495_vm9, 0, %v494_v12  ;;  %v436_v31 = vsel %vm785_vm1, 0, %v434_v29  ;;  %v151_v52 = vand.u32 2147483648, %v767_v8 }
  0x82   :  { %v286_v14 = vmul.f32 %v285_v40, %v283_v26  ;;  %v293_v15 = vmul.f32 %v292_v11, %v283_v26  ;;  %v419_v17 = vsub.s32 32, %v418_v4  ;;  %v420_v42 = vshll.u32 %v411_v59, %v418_v4 }
  0x83   :  { %v423_v19 = vsub.s32 4294967266, %v418_v4  ;;  %v144_v59 = vmul.f32 0.5, %v143_v53  ;;  %v453_v13 = vand.u32 3, %v436_v31 }
  0x84   :  { %v287_v16 = vadd.f32 -0.4999988, %v286_v14  ;;  %v294_v41 = vadd.f32 -0.16666654, %v293_v15  ;;  %v421_v27 = vshrl.u32 %v403_v30, %v419_v17 }
  0x85   :  { %v424_v28 = vadd.s32 127, %v423_v19  ;;  %v145_v7 = vsub.f32 1.5, %v144_v59  ;;  %vm458_vm3 = vcmp.eq.s32.totalorder %v453_v13, 2  ;;  %vm455_vm5 = vcmp.eq.s32.totalorder %v453_v13, 0 }
  0x86   :  { %v288_v21 = vmul.f32 %v287_v16, %v283_v26  ;;  %v295_v58 = vmul.f32 %v294_v41, %v283_v26  ;;  %v422_v18 = vor.u32 %v421_v27, %v420_v42  ;;  %vm454_vm6 = vcmp.lt.s32.totalorder %v453_v13, 2 }
  0x87   :  { %v425_v35 = vshll.u32 %v424_v28, 23  ;;  %v146_v40 = vmul.f32 %v512_v33, %v145_v7  ;;  %v466_v28 = vld [vmem:[#allocation3 + $0x8] sm:$0xff] }
  0x88   :  { %v289_v0 = vadd.f32 1.0, %v288_v21  ;;  %v296_v32 = vadd.f32 1.0, %v295_v58  ;;  %v429_v39 = vcvt.s32.f32 %v422_v18 }
  0x89   :  { %v426_v37 = vor.u32 4788187, %v425_v35  ;;  %v147_v22 = vmul.f32 %v146_v40, %v767_v8 }
  0x8a   :  { %v297_v36 = vmul.f32 %v296_v32, %v281_v24  ;;  %v305_v47 = vxor.u32 2147483648, %v289_v0 }
  0x8b   :  { %v427_v23 = vand.u32 2147483647, %v426_v37  ;;  %v149_v3 = vsel %vm148_vm2, %v767_v8, %v147_v22 }
  0x8c   :  { %v302_v20 = vxor.u32 2147483648, %v297_v36  ;;  %v306_v45 = vsel %vm304_vm11, %v305_v47, %v297_v36  ;;  %v152_v19 = vsel %vm150_vm4, %v151_v52, %v149_v3 }
  0x8d   :  { %v430_v51 = vmul.f32 %v429_v39, %v427_v23 }
  0x8e   :  { %v303_v49 = vsel %vm301_vm13, %v289_v0, %v302_v20 }
  0x8f   :  { %v307_v50 = vsel %vm300_vm14, %v303_v49, %v306_v45  ;;  %v431_v54 = vxor.u32 2147483648, %v430_v51 }
  0x90   :  { %v308_v10 = vsel %vm298_vm15, nan, %v307_v50 }
  0x91   :  { %v463_v56 = vmul.f32 %v308_v10, %v140_v46  ;;  %v432_v60 = vsel %vm311_vm0, %v431_v54, %v430_v51 }
  0x92   :  { %v435_v63 = vsel %vm785_vm1, %v597_v62, %v432_v60 }
  0x93   :  { %v467_v44 = vmul.f32 0.1, %v463_v56  ;;  %v437_v1 = vmul.f32 %v435_v63, %v435_v63 }
  0x95   :  { %v469_v24 = vadd.f32 %v467_v44, %v465_v57  ;;  %v438_v48 = vmul.f32 -0.001358992, %v437_v1  ;;  %v445_v26 = vmul.f32 -0.00019511016, %v437_v1 }
  0x97   :  { %471 = vst [vmem:[#allocation6] sm:$0xff] %v469_v24  ;;  %v439_v5 = vadd.f32 0.041655596, %v438_v48  ;;  %v446_v6 = vadd.f32 0.008332121, %v445_v26 }
  0x99   :  { %v440_v9 = vmul.f32 %v439_v5, %v437_v1  ;;  %v447_v38 = vmul.f32 %v446_v6, %v437_v1 }
  0x9b   :  { %v441_v11 = vadd.f32 -0.4999988, %v440_v9  ;;  %v448_v12 = vadd.f32 -0.16666654, %v447_v38 }
  0x9d   :  { %v442_v14 = vmul.f32 %v441_v11, %v437_v1  ;;  %v449_v15 = vmul.f32 %v448_v12, %v437_v1 }
  0x9f   :  { %v443_v30 = vadd.f32 1.0, %v442_v14  ;;  %v450_v16 = vadd.f32 1.0, %v449_v15 }
  0xa1   :  { %v451_v41 = vmul.f32 %v450_v16, %v435_v63  ;;  %v459_v4 = vxor.u32 2147483648, %v443_v30 }
  0xa3   :  { %v456_v17 = vxor.u32 2147483648, %v451_v41  ;;  %v460_v42 = vsel %vm458_vm3, %v459_v4, %v451_v41 }
  0xa5   :  { %v457_v21 = vsel %vm455_vm5, %v443_v30, %v456_v17 }
  0xa6   :  { %v461_v58 = vsel %vm454_vm6, %v457_v21, %v460_v42 }
  0xa7   :  { %v462_v25 = vsel %vm452_vm7, nan, %v461_v58 }
  0xa8   :  { %v464_v27 = vmul.f32 %v462_v25, %v152_v19 }
  0xaa   :  { %v468_v0 = vmul.f32 0.1, %v464_v27 }
  0xac   :  { %v470_v8 = vadd.f32 %v468_v0, %v466_v28 }
  0xae   :  { %472 = vst [vmem:[#allocation6 + $0x8] sm:$0xff] %v470_v8 }
  0xaf   :  { %483 = dma.vmem_to_hbm [thread:$0]  %s479_s24, 256, %s481_s27, [#allocation5]  }
  0xb0   :  { %563 = dma.done.wait [#allocation5], 256  }
  0xb1   :  { %564 = vsyncadd [#allocation5], 4294967040 }
  0xb2   :  { %488 = vsyncpa [#allocation4], 1 }
  0xb3   :  { %489 = vsyncpa [#allocation5], 1 }

</bundles_post_ra>
